<compile_context>
chip_gen: v7x
topology: tpu7x:2x2x1
jax: 0.10.0
libtpu: 0.0.40
codegen_flags: <defaults>
</compile_context>

<pallas_src>
import jax
import jax.numpy as jnp
from jax.experimental import pallas as pl
from jax.experimental.pallas import tpu as pltpu

_SUBLANE = 8
_LANE = 128


def _round_up(a, m):
    return (a + m - 1) // m * m


def _cdiv(a, b):
    return (a + b - 1) // b


def _generator_kernel(x_ref, w1_ref, b1_ref, w2_ref, b2_ref, o_ref):
    # First linear: (TB, z) @ (z, 256) -> f32 accumulator on the MXU.
    h = jnp.dot(x_ref[...], w1_ref[...], preferred_element_type=jnp.float32)
    h = h + b1_ref[...]                        # bias in f32 (broadcast (1, 256))
    h = jnp.maximum(h, 0.1 * h)                # LeakyReLU(0.1): mul + max on the VPU
    h = h.astype(w2_ref.dtype)                 # back to streaming dtype for the MXU
    # Second linear: (TB, 256) @ (256, img_dim) -> f32 accumulator.
    y = jnp.dot(h, w2_ref[...], preferred_element_type=jnp.float32)
    y = y + b2_ref[...]                        # bias in f32 (broadcast (1, img_dim))
    # tanh on the EUP in f32, store in the (bf16) output dtype.
    # TODO(synk): on v6e/v7x a bf16 tanh path would shave a little EUP time; kept f32
    # so the same kernel stays on v5e's f32-only EUP.
    o_ref[...] = jnp.tanh(y).astype(o_ref.dtype)


def _vmem_estimate_bytes(tile, z_dim, hidden, img_dim, cd_bytes, out_bytes):
    """Honest VMEM estimate: pipelined blocks + resident weights + kernel temps,
    with lane padding of the minor dims accounted for."""
    zl = _round_up(z_dim, _LANE)
    hl = _round_up(hidden, _LANE)
    il = _round_up(img_dim, _LANE)
    x_blk = 2 * tile * zl * cd_bytes                       # double-buffered input
    o_blk = 2 * tile * il * out_bytes                      # double-buffered output
    weights = 2 * ((zl * hl + hl * il) * cd_bytes + (hl + il) * 4)  # (2x buffered)
    interm = tile * hl * (4 + cd_bytes) + tile * il * 4    # h f32, h bf16, y f32
    return x_blk + o_blk + weights + interm


def _default_vmem_budget_bytes():
    # Chip-aware: ~1/4 of physical VMEM, capped at 28 MiB.
    # v5e/v6e (128 MiB physical) -> 28 MiB; v7x (64 MiB) -> 16 MiB.
    try:
        cap = pltpu.get_tpu_info().vmem_capacity_bytes
    except Exception:
        cap = 64 * 1024 * 1024
    return min(cap // 4, 28 * 1024 * 1024)


def generator_forward(x, w1, b1, w2, b2, *, batch_tile=1024,
                      compute_dtype=jnp.bfloat16,
                      out_dtype=jnp.bfloat16,
                      vmem_budget_bytes=None):
    """x: (B, z_dim) f32, w1: (z_dim, 256), w2: (256, img_dim).
    Returns (B, img_dim) `out_dtype` = tanh(leaky_relu(x@w1+b1, 0.1) @ w2 + b2)."""
    B, z_dim = x.shape
    zw, hidden = w1.shape
    hw, img_dim = w2.shape
    assert zw == z_dim and hw == hidden

    if vmem_budget_bytes is None:
        vmem_budget_bytes = _default_vmem_budget_bytes()
    cd_bytes = jnp.dtype(compute_dtype).itemsize
    out_bytes = jnp.dtype(out_dtype).itemsize

    # ---- batch tile selection ----
    tile = min(_round_up(max(B, 1), _SUBLANE), _round_up(batch_tile, _SUBLANE))
    # Keep >= 2 grid steps when the batch is big enough (v7x: 2 TCs split the
    # "parallel" axis) but never shrink below 256 rows (step-overhead amortization
    # on single-TC v5e/v6e).
    tile = min(tile, max(256, _round_up(_cdiv(B, 2), _SUBLANE)))
    tile = max(tile, _SUBLANE)
    # Cap by the honest VMEM estimate.
    while tile > _SUBLANE and _vmem_estimate_bytes(
            tile, z_dim, hidden, img_dim, cd_bytes, out_bytes) > vmem_budget_bytes:
        tile = max(_SUBLANE, _round_up(tile // 2, _SUBLANE))
    # Minimize batch-padding waste: keep the step count, shrink the tile to fit B.
    n_steps = _cdiv(B, tile)
    tile = max(_SUBLANE, _round_up(_cdiv(B, n_steps), _SUBLANE))
    B_pad = n_steps * tile
    grid = (n_steps,)

    # ---- wrapper-side layout plumbing (cheap XLA ops, no column padding) ----
    xc = x.astype(compute_dtype)
    if B_pad != B:
        xc = jnp.pad(xc, ((0, B_pad - B), (0, 0)))
    w1c = w1.astype(compute_dtype)
    w2c = w2.astype(compute_dtype)
    b1r = b1.reshape(1, hidden).astype(jnp.float32)
    b2r = b2.reshape(1, img_dim).astype(jnp.float32)

    out = pl.pallas_call(
        _generator_kernel,
        out_shape=jax.ShapeDtypeStruct((B_pad, img_dim), out_dtype),
        grid_spec=pltpu.PrefetchScalarGridSpec(
            num_scalar_prefetch=0,
            grid=grid,
            in_specs=[
                pl.BlockSpec((tile, z_dim), lambda i: (i, 0)),     # streamed input
                pl.BlockSpec((z_dim, hidden), lambda i: (0, 0)),   # w1 (resident)
                pl.BlockSpec((1, hidden), lambda i: (0, 0)),       # b1 (resident)
                pl.BlockSpec((hidden, img_dim), lambda i: (0, 0)),  # w2 (resident)
                pl.BlockSpec((1, img_dim), lambda i: (0, 0)),      # b2 (resident)
            ],
            out_specs=pl.BlockSpec((tile, img_dim), lambda i: (i, 0)),
        ),
        compiler_params=pltpu.CompilerParams(
            dimension_semantics=("parallel",),        # batch axis -> 2 TCs on v7x
            vmem_limit_bytes=int(vmem_budget_bytes)),
    )(xc, w1c, b1r, w2c, b2r)

    if B_pad != B:
        out = out[:B]
    return out


def _reference(x, w1, b1, w2, b2):
    h = x @ w1 + b1
    h = jnp.where(h > 0, h, 0.1 * h)
    return jnp.tanh(h @ w2 + b2)


if __name__ == "__main__":
    key = jax.random.PRNGKey(0)
    kx, kw1, kb1, kw2, kb2, kx2 = jax.random.split(key, 6)

    # Small shapes consistent with the module: z_dim -> 256 -> img_dim (MNIST-like).
    Z_DIM, HIDDEN, IMG_DIM = 64, 256, 784
    B = 16

    x = jax.random.normal(kx, (B, Z_DIM), dtype=jnp.float32)
    lim1 = 1.0 / (Z_DIM ** 0.5)
    w1 = jax.random.uniform(kw1, (Z_DIM, HIDDEN), jnp.float32, -lim1, lim1)
    b1 = jax.random.uniform(kb1, (HIDDEN,), jnp.float32, -lim1, lim1)
    lim2 = 1.0 / (HIDDEN ** 0.5)
    w2 = jax.random.uniform(kw2, (HIDDEN, IMG_DIM), jnp.float32, -lim2, lim2)
    b2 = jax.random.uniform(kb2, (IMG_DIM,), jnp.float32, -lim2, lim2)

    out = jax.block_until_ready(generator_forward(x, w1, b1, w2, b2))
    ref = _reference(x, w1, b1, w2, b2)
    assert out.shape == (B, IMG_DIM)
    assert out.dtype == jnp.bfloat16
    # bf16-streamed inputs + bf16 output vs full-f32 reference.
    assert jnp.allclose(out.astype(jnp.float32), ref, atol=4e-2, rtol=4e-2), \
        "mismatch vs reference (small)"

    # Batch not a multiple of the tile: exercises tile shrinking, batch padding and
    # the row-only slice (no column padding anywhere).
    B2 = 260
    x2 = jax.random.normal(kx2, (B2, Z_DIM), dtype=jnp.float32)
    out2 = jax.block_until_ready(generator_forward(x2, w1, b1, w2, b2))
    ref2 = _reference(x2, w1, b1, w2, b2)
    assert out2.shape == (B2, IMG_DIM)
    assert jnp.allclose(out2.astype(jnp.float32), ref2, atol=4e-2, rtol=4e-2), \
        "mismatch vs reference (remainder batch)"

    print("KERNEL_OK")
</pallas_src>

<mosaic_0001>
module attributes {stable_mosaic.version = 11 : i64} {
  func.func @_generator_kernel(%arg0: i32, %arg1: memref<16x64xbf16, #tpu.memory_space<vmem>>, %arg2: memref<64x256xbf16, #tpu.memory_space<vmem>>, %arg3: memref<1x256xf32, #tpu.memory_space<vmem>>, %arg4: memref<256x784xbf16, #tpu.memory_space<vmem>>, %arg5: memref<1x784xf32, #tpu.memory_space<vmem>>, %arg6: memref<16x784xbf16, #tpu.memory_space<vmem>>) attributes {dimension_semantics = [#tpu.dimension_semantics<parallel>], iteration_bounds = array<i64: 1>, scalar_prefetch = 0 : i64, scratch_operands = 0 : i64, tpu.core_type = #tpu.core_type<tc>, window_params = [{transform_indices = @transform_0, window_bounds = array<i64: 16, 64>}, {pipeline_mode = #tpu.pipeline_mode<synchronous>, transform_indices = @transform_1, window_bounds = array<i64: 64, 256>}, {pipeline_mode = #tpu.pipeline_mode<synchronous>, transform_indices = @transform_2, window_bounds = array<i64: 1, 256>}, {pipeline_mode = #tpu.pipeline_mode<synchronous>, transform_indices = @transform_3, window_bounds = array<i64: 256, 784>}, {pipeline_mode = #tpu.pipeline_mode<synchronous>, transform_indices = @transform_4, window_bounds = array<i64: 1, 784>}, {transform_indices = @transform_5, window_bounds = array<i64: 16, 784>}]} {
    %c0 = arith.constant 0 : index
    %c0_0 = arith.constant 0 : index
    %0 = vector.load %arg1[%c0, %c0_0] : memref<16x64xbf16, #tpu.memory_space<vmem>>, vector<16x64xbf16>
    %c0_1 = arith.constant 0 : index
    %c0_2 = arith.constant 0 : index
    %1 = vector.load %arg2[%c0_1, %c0_2] : memref<64x256xbf16, #tpu.memory_space<vmem>>, vector<64x256xbf16>
    %cst = arith.constant dense<0.000000e+00> : vector<16x256xf32>
    %2 = tpu.matmul %0, %1, %cst {dimension_numbers = #tpu.dot_dimension_numbers<[1], [0], [0], [1], [0, 0, 1, 1], [], []>} : vector<16x64xbf16>, vector<64x256xbf16>, vector<16x256xf32> -> vector<16x256xf32>
    %c0_3 = arith.constant 0 : index
    %c0_4 = arith.constant 0 : index
    %3 = vector.load %arg3[%c0_3, %c0_4] : memref<1x256xf32, #tpu.memory_space<vmem>>, vector<1x256xf32>
    %4 = vector.broadcast %3 : vector<1x256xf32> to vector<16x256xf32>
    %5 = arith.addf %2, %4 : vector<16x256xf32>
    %cst_5 = arith.constant 1.000000e-01 : f32
    %6 = vector.broadcast %cst_5 : f32 to vector<16x256xf32>
    %7 = arith.mulf %6, %5 : vector<16x256xf32>
    %8 = arith.maximumf %5, %7 : vector<16x256xf32>
    %9 = arith.truncf %8 : vector<16x256xf32> to vector<16x256xbf16>
    %c0_6 = arith.constant 0 : index
    %c0_7 = arith.constant 0 : index
    %10 = vector.load %arg4[%c0_6, %c0_7] : memref<256x784xbf16, #tpu.memory_space<vmem>>, vector<256x784xbf16>
    %cst_8 = arith.constant dense<0.000000e+00> : vector<16x784xf32>
    %11 = tpu.matmul %9, %10, %cst_8 {dimension_numbers = #tpu.dot_dimension_numbers<[1], [0], [0], [1], [0, 0, 1, 1], [], []>} : vector<16x256xbf16>, vector<256x784xbf16>, vector<16x784xf32> -> vector<16x784xf32>
    %c0_9 = arith.constant 0 : index
    %c0_10 = arith.constant 0 : index
    %12 = vector.load %arg5[%c0_9, %c0_10] : memref<1x784xf32, #tpu.memory_space<vmem>>, vector<1x784xf32>
    %13 = vector.broadcast %12 : vector<1x784xf32> to vector<16x784xf32>
    %14 = arith.addf %11, %13 : vector<16x784xf32>
    %15 = math.tanh %14 : vector<16x784xf32>
    %16 = arith.truncf %15 : vector<16x784xf32> to vector<16x784xbf16>
    %c0_11 = arith.constant 0 : index
    %c0_12 = arith.constant 0 : index
    %17 = vector.load %arg6[%c0_11, %c0_12] : memref<16x784xbf16, #tpu.memory_space<vmem>>, vector<16x784xbf16>
    tpu.vector_store %arg6[%c0_11, %c0_12], %16 {strides = array<i32>} : memref<16x784xbf16, #tpu.memory_space<vmem>>, vector<16x784xbf16>,
    return
  }
  func.func @transform_0(%arg0: i32) -> (i32, i32) {
    %c0_i32 = arith.constant 0 : i32
    %c0_i32_0 = arith.constant 0 : i32
    return %arg0, %c0_i32 : i32, i32
  }
  func.func @transform_1(%arg0: i32) -> (i32, i32) {
    %c0_i32 = arith.constant 0 : i32
    %c0_i32_0 = arith.constant 0 : i32
    %c0_i32_1 = arith.constant 0 : i32
    return %c0_i32, %c0_i32_0 : i32, i32
  }
  func.func @transform_2(%arg0: i32) -> (i32, i32) {
    %c0_i32 = arith.constant 0 : i32
    %c0_i32_0 = arith.constant 0 : i32
    %c0_i32_1 = arith.constant 0 : i32
    return %c0_i32, %c0_i32_0 : i32, i32
  }
  func.func @transform_3(%arg0: i32) -> (i32, i32) {
    %c0_i32 = arith.constant 0 : i32
    %c0_i32_0 = arith.constant 0 : i32
    %c0_i32_1 = arith.constant 0 : i32
    return %c0_i32, %c0_i32_0 : i32, i32
  }
  func.func @transform_4(%arg0: i32) -> (i32, i32) {
    %c0_i32 = arith.constant 0 : i32
    %c0_i32_0 = arith.constant 0 : i32
    %c0_i32_1 = arith.constant 0 : i32
    return %c0_i32, %c0_i32_0 : i32, i32
  }
  func.func @transform_5(%arg0: i32) -> (i32, i32) {
    %c0_i32 = arith.constant 0 : i32
    %c0_i32_0 = arith.constant 0 : i32
    return %arg0, %c0_i32 : i32, i32
  }
}

</mosaic_0001>

<bundles_post_ra>
// kernel: tpu_custom_call.1
= control target key start
LH: loop header
LB: loop body
LE: loop exit
PB: predicated region body
PF: predicated region fallthrough
CT: control target
= control target key end

     0   :  { %v1529_v2 = vmov 0   ;;  %vm89_vm0 = vcmask 523264   ;;  %s1976_s0 = inlined_call_operand.vmem [shape: bf16[16,64], index: 0, kind: input, shape index: {}]   ;;  %s1977_s1 = inlined_call_operand.vmem [shape: bf16[64,256], index: 1, kind: input, shape index: {}]   ;;  %s1978_s2 = inlined_call_operand.vmem [shape: f32[1,256], index: 2, kind: input, shape index: {}]   ;;  %s1979_s3 = inlined_call_operand.vmem [shape: bf16[256,784], index: 3, kind: input, shape index: {}]   ;;  %s1980_s4 = inlined_call_operand.vmem [shape: f32[1,784], index: 4, kind: input, shape index: {}]   ;;  %s1981_s5 = inlined_call_operand.hbm [shape: bf16[16,784], index: 5, kind: output, shape index: {}]  }
   0x1   :  { %v1304_v0 = vld [vmem:[%s1977_s1 + $0x4] ss:$8 sps:$4 sm:$0xff]   ;;  %v1306_v1 = vld [vmem:[%s1977_s1] ss:$8 sps:$4 sm:$0xff]   ;;  %125 = vmatprep.mubr.bf16.mxu0 %v1529_v2  ;;  %v1307_v3 = vld [vmem:[%s1977_s1 + $0x14] ss:$8 sps:$4 sm:$0xff]  }
   0x2   :  { %93 = vmatprep.subr.bf16.mxu0 %v1304_v0  ;;  %v1309_v4 = vld [vmem:[%s1977_s1 + $0x10] ss:$8 sps:$4 sm:$0xff]   ;;  %v1310_v5 = vld [vmem:[%s1977_s1 + $0x24] ss:$8 sps:$4 sm:$0xff]   ;;  %v1312_v6 = vld [vmem:[%s1977_s1 + $0x20] ss:$8 sps:$4 sm:$0xff]  }
   0x3   :  { %94 = vmatpush1.bf16.msra.mxu0 %v1306_v1  ;;  %v1317_v7 = vld [vmem:[%s1979_s3 + $0x4] ss:$28 sps:$4 sm:$0xff]   ;;  %v1313_v8 = vld [vmem:[%s1977_s1 + $0x34] ss:$8 sps:$4 sm:$0xff]   ;;  %v1315_v11 = vld [vmem:[%s1977_s1 + $0x30] ss:$8 sps:$4 sm:$0xff]  }
   0x4   :  { %95 = vmatprep.subr.bf16.mxu0 %v1307_v3  ;;  %v1322_v9 = vld [vmem:[%s1979_s3] ss:$28 sps:$4 sm:$0xff]   ;;  %887 = vmatprep.subr.bf16.mxu1 %v1317_v7  ;;  %v1321_v12 = vld [vmem:[%s1979_s3 + $0xc] ss:$28 sps:$4 sm:$0xff]   ;;  %v1328_v13 = vld [vmem:[%s1979_s3 + $0x38] ss:$28 sps:$4 sm:$0xff]  }
   0x5   :  { %v1323_v10 = vld [vmem:[%s1979_s3 + $0x3c] ss:$28 sps:$4 sm:$0xff]   ;;  %888 = vmatpush1.bf16.msra.mxu1 %v1322_v9  ;;  %v1329_v14 = vld [vmem:[%s1979_s3 + $0x74] ss:$28 sps:$4 sm:$0xff]   ;;  %v1316_v15 = vld [vmem:[%s1976_s0] sm:$0xff]  }
   0x6   :  { %889 = vmatprep.subr.bf16.mxu1 %v1323_v10  ;;  %v1319_v16 = vld [vmem:[%s1979_s3 + $0x8] ss:$28 sps:$4 sm:$0xff]   ;;  %v1334_v17 = vld [vmem:[%s1979_s3 + $0x70] ss:$28 sps:$4 sm:$0xff]   ;;  %v1325_v21 = vld [vmem:[%s1979_s3 + $0x40] ss:$28 sps:$4 sm:$0xff]  }
   0x7   :  { %96 = vmatpush1.bf16.msra.mxu0 %v1309_v4  ;;  %v1335_v18 = vld [vmem:[%s1979_s3 + $0xac] ss:$28 sps:$4 sm:$0xff]   ;;  %v1327_v19 = vld [vmem:[%s1979_s3 + $0x44] ss:$28 sps:$4 sm:$0xff]   ;;  %v1333_v23 = vld [vmem:[%s1979_s3 + $0x7c] ss:$28 sps:$4 sm:$0xff]  }
   0x8   :  { %97 = vmatprep.subr.bf16.mxu0 %v1310_v5  ;;  %v1340_v20 = vld [vmem:[%s1979_s3 + $0xa8] ss:$28 sps:$4 sm:$0xff]   ;;  %v1331_v24 = vld [vmem:[%s1979_s3 + $0x78] ss:$28 sps:$4 sm:$0xff]   ;;  %v1346_v25 = vld [vmem:[%s1979_s3 + $0xe0] ss:$28 sps:$4 sm:$0xff]  }
   0x9   :  { %890 = vmatpush1.bf16.msra.mxu1 %v1328_v13  ;;  %v1341_v22 = vld [vmem:[%s1979_s3 + $0xe4] ss:$28 sps:$4 sm:$0xff]   ;;  %v1347_v26 = vld [vmem:[%s1979_s3 + $0x11c] ss:$28 sps:$4 sm:$0xff]   ;;  %v1339_v27 = vld [vmem:[%s1979_s3 + $0xb4] ss:$28 sps:$4 sm:$0xff]  }
   0xa   :  { %891 = vmatprep.subr.bf16.mxu1 %v1329_v14  ;;  %v1352_v28 = vld [vmem:[%s1979_s3 + $0x118] ss:$28 sps:$4 sm:$0xff]   ;;  %v1337_v29 = vld [vmem:[%s1979_s3 + $0xb0] ss:$28 sps:$4 sm:$0xff]   ;;  %v1343_v32 = vld [vmem:[%s1979_s3 + $0xe8] ss:$28 sps:$4 sm:$0xff]  }
   0xb   :  { %98 = vmatpush1.bf16.msra.mxu0 %v1312_v6  ;;  %v1353_v30 = vld [vmem:[%s1979_s3 + $0x154] ss:$28 sps:$4 sm:$0xff]   ;;  %v1345_v31 = vld [vmem:[%s1979_s3 + $0xec] ss:$28 sps:$4 sm:$0xff]   ;;  %v1351_v35 = vld [vmem:[%s1979_s3 + $0x124] ss:$28 sps:$4 sm:$0xff]  }
   0xc   :  { %99 = vmatprep.subr.bf16.mxu0 %v1313_v8  ;;  %v1358_v33 = vld [vmem:[%s1979_s3 + $0x150] ss:$28 sps:$4 sm:$0xff]   ;;  %v1364_v36 = vld [vmem:[%s1979_s3 + $0x188] ss:$28 sps:$4 sm:$0xff]   ;;  %v1349_v37 = vld [vmem:[%s1979_s3 + $0x120] ss:$28 sps:$4 sm:$0xff]  }
   0xd   :  { %892 = vmatpush1.bf16.msra.mxu1 %v1334_v17  ;;  %v1359_v34 = vld [vmem:[%s1979_s3 + $0x18c] ss:$28 sps:$4 sm:$0xff]   ;;  %v1365_v38 = vld [vmem:[%s1979_s3 + $0x1c4] ss:$28 sps:$4 sm:$0xff]   ;;  %v1357_v39 = vld [vmem:[%s1979_s3 + $0x15c] ss:$28 sps:$4 sm:$0xff]  }
   0xe   :  { %893 = vmatprep.subr.bf16.mxu1 %v1335_v18  ;;  %v1355_v40 = vld [vmem:[%s1979_s3 + $0x158] ss:$28 sps:$4 sm:$0xff]   ;;  %v1370_v41 = vld [vmem:[%s1979_s3 + $0x1c0] ss:$28 sps:$4 sm:$0xff]   ;;  %v1361_v45 = vld [vmem:[%s1979_s3 + $0x190] ss:$28 sps:$4 sm:$0xff]  }
   0xf   :  { %100 = vmatpush1.bf16.msra.mxu0 %v1315_v11  ;;  %v1371_v42 = vld [vmem:[%s1979_s3 + $0x1fc] ss:$28 sps:$4 sm:$0xff]   ;;  %v1363_v43 = vld [vmem:[%s1979_s3 + $0x194] ss:$28 sps:$4 sm:$0xff]   ;;  %v1369_v47 = vld [vmem:[%s1979_s3 + $0x1cc] ss:$28 sps:$4 sm:$0xff]  }
  0x10   :  { %930 = vmatprep.subr.bf16.mxu0 %v1321_v12  ;;  %v1376_v44 = vld [vmem:[%s1979_s3 + $0x1f8] ss:$28 sps:$4 sm:$0xff]   ;;  %v1382_v48 = vld [vmem:[%s1979_s3 + $0x230] ss:$28 sps:$4 sm:$0xff]   ;;  %v1367_v49 = vld [vmem:[%s1979_s3 + $0x1c8] ss:$28 sps:$4 sm:$0xff]  }
  0x11   :  { %894 = vmatpush1.bf16.msra.mxu1 %v1340_v20  ;;  %v1377_v46 = vld [vmem:[%s1979_s3 + $0x234] ss:$28 sps:$4 sm:$0xff]   ;;  %v1383_v50 = vld [vmem:[%s1979_s3 + $0x26c] ss:$28 sps:$4 sm:$0xff]   ;;  %v1375_v51 = vld [vmem:[%s1979_s3 + $0x204] ss:$28 sps:$4 sm:$0xff]  }
  0x12   :  { %1149 = vmatmul.mubr.msk.bf16.vlgmr.msra.gmra.mrb[0].mxu0 %vm89_vm0, %v1316_v15  ;;  %895 = vmatprep.subr.bf16.mxu1 %v1341_v22  ;;  %v1388_v52 = vld [vmem:[%s1979_s3 + $0x268] ss:$28 sps:$4 sm:$0xff]   ;;  %v1373_v53 = vld [vmem:[%s1979_s3 + $0x200] ss:$28 sps:$4 sm:$0xff]   ;;  %v1379_v57 = vld [vmem:[%s1979_s3 + $0x238] ss:$28 sps:$4 sm:$0xff]  }
  0x13   :  { %931 = vmatpush1.bf16.msra.mxu0 %v1319_v16  ;;  %v1389_v54 = vld [vmem:[%s1979_s3 + $0x2a4] ss:$28 sps:$4 sm:$0xff]   ;;  %v1381_v55 = vld [vmem:[%s1979_s3 + $0x23c] ss:$28 sps:$4 sm:$0xff]   ;;  %v1387_v58 = vld [vmem:[%s1979_s3 + $0x274] ss:$28 sps:$4 sm:$0xff]  }
  0x14   :  { %932 = vmatprep.subr.bf16.mxu0 %v1327_v19  ;;  %v1394_v56 = vld [vmem:[%s1979_s3 + $0x2a0] ss:$28 sps:$4 sm:$0xff]   ;;  %v1385_v59 = vld [vmem:[%s1979_s3 + $0x270] ss:$28 sps:$4 sm:$0xff]   ;;  %v1391_v61 = vld [vmem:[%s1979_s3 + $0x2a8] ss:$28 sps:$4 sm:$0xff]  }
  0x15   :  { %896 = vmatpush1.bf16.msra.mxu1 %v1346_v25  ;;  %v1393_v60 = vld [vmem:[%s1979_s3 + $0x2ac] ss:$28 sps:$4 sm:$0xff]  }
  0x16   :  { %897 = vmatprep.subr.bf16.mxu1 %v1347_v26 }
  0x17   :  { %933 = vmatpush1.bf16.msra.mxu0 %v1325_v21 }
  0x18   :  { %934 = vmatprep.subr.bf16.mxu0 %v1333_v23 }
  0x19   :  { %898 = vmatpush1.bf16.msra.mxu1 %v1352_v28 }
  0x1a   :  { %899 = vmatprep.subr.bf16.mxu1 %v1353_v30 }
  0x1b   :  { %935 = vmatpush1.bf16.msra.mxu0 %v1331_v24 }
  0x1c   :  { %936 = vmatprep.subr.bf16.mxu0 %v1339_v27 }
  0x1d   :  { %900 = vmatpush1.bf16.msra.mxu1 %v1358_v33 }
  0x1e   :  { %901 = vmatprep.subr.bf16.mxu1 %v1359_v34 }
  0x1f   :  { %937 = vmatpush1.bf16.msra.mxu0 %v1337_v29 }
  0x20   :  { %938 = vmatprep.subr.bf16.mxu0 %v1345_v31 }
  0x21   :  { %902 = vmatpush1.bf16.msra.mxu1 %v1364_v36 }
  0x22   :  { %903 = vmatprep.subr.bf16.mxu1 %v1365_v38 }
  0x23   :  { %939 = vmatpush1.bf16.msra.mxu0 %v1343_v32 }
  0x24   :  { %940 = vmatprep.subr.bf16.mxu0 %v1351_v35 }
  0x25   :  { %904 = vmatpush1.bf16.msra.mxu1 %v1370_v41 }
  0x26   :  { %905 = vmatprep.subr.bf16.mxu1 %v1371_v42 }
  0x27   :  { %941 = vmatpush1.bf16.msra.mxu0 %v1349_v37 }
  0x28   :  { %942 = vmatprep.subr.bf16.mxu0 %v1357_v39 }
  0x29   :  { %906 = vmatpush1.bf16.msra.mxu1 %v1376_v44 }
  0x2a   :  { %907 = vmatprep.subr.bf16.mxu1 %v1377_v46 }
  0x2b   :  { %943 = vmatpush1.bf16.msra.mxu0 %v1355_v40 }
  0x2c   :  { %944 = vmatprep.subr.bf16.mxu0 %v1363_v43 }
  0x2d   :  { %908 = vmatpush1.bf16.msra.mxu1 %v1382_v48 }
  0x2e   :  { %909 = vmatprep.subr.bf16.mxu1 %v1383_v50 }
  0x2f   :  { %945 = vmatpush1.bf16.msra.mxu0 %v1361_v45 }
  0x30   :  { %946 = vmatprep.subr.bf16.mxu0 %v1369_v47 }
  0x31   :  { %910 = vmatpush1.bf16.msra.mxu1 %v1388_v52 }
  0x32   :  { %911 = vmatprep.subr.bf16.mxu1 %v1389_v54 }
  0x33   :  { %947 = vmatpush1.bf16.msra.mxu0 %v1367_v49 }
  0x34   :  { %948 = vmatprep.subr.bf16.mxu0 %v1375_v51 }
  0x35   :  { %912 = vmatpush1.bf16.msra.mxu1 %v1394_v56 }
  0x37   :  { %949 = vmatpush1.bf16.msra.mxu0 %v1373_v53 }
  0x38   :  { %950 = vmatprep.subr.bf16.mxu0 %v1381_v55 }
  0x3b   :  { %951 = vmatpush1.bf16.msra.mxu0 %v1379_v57 }
  0x3c   :  { %952 = vmatprep.subr.bf16.mxu0 %v1387_v58 }
  0x3f   :  { %953 = vmatpush1.bf16.msra.mxu0 %v1385_v59 }
  0x40   :  { %954 = vmatprep.subr.bf16.mxu0 %v1393_v60 }
  0x41   :  { %10 = vsyncpa [#allocation3], 0  ;;  %v1395_v62 = vld [vmem:[%s1979_s3 + $0x2dc] ss:$28 sps:$4 sm:$0xff]   ;;  %v1399_v63 = vld [vmem:[%s1979_s3 + $0x2e4] ss:$28 sps:$4 sm:$0xff]   ;;  %v34_v12 = vlaneseq }
  0x42   :  { %v1397_v0 = vld [vmem:[%s1979_s3 + $0x2e0] ss:$28 sps:$4 sm:$0xff]   ;;  %v1400_v1 = vld [vmem:[%s1979_s3 + $0x2d8] ss:$28 sps:$4 sm:$0xff]   ;;  %913 = vmatprep.subr.bf16.mxu1 %v1395_v62  ;;  %v1406_v5 = vld [vmem:[%s1979_s3 + $0x310] ss:$28 sps:$4 sm:$0xff]  }
  0x43   :  { %955 = vmatpush1.bf16.msra.mxu0 %v1391_v61  ;;  %914 = vmatpush1.bf16.msra.mxu1 %v1400_v1  ;;  %v1401_v2 = vld [vmem:[%s1979_s3 + $0x314] ss:$28 sps:$4 sm:$0xff]   ;;  %v1405_v3 = vld [vmem:[%s1979_s3 + $0x31c] ss:$28 sps:$4 sm:$0xff]   ;;  %v1407_v6 = vld [vmem:[%s1979_s3 + $0x34c] ss:$28 sps:$4 sm:$0xff]  }
  0x44   :  { %956 = vmatprep.subr.bf16.mxu0 %v1399_v63  ;;  %v1403_v4 = vld [vmem:[%s1979_s3 + $0x318] ss:$28 sps:$4 sm:$0xff]   ;;  %915 = vmatprep.subr.bf16.mxu1 %v1401_v2  ;;  %v1409_v8 = vld [vmem:[%s1979_s3 + $0x350] ss:$28 sps:$4 sm:$0xff]   ;;  %v1412_v9 = vld [vmem:[%s1979_s3 + $0x348] ss:$28 sps:$4 sm:$0xff]  }
  0x45   :  { %v1411_v7 = vld [vmem:[%s1979_s3 + $0x354] ss:$28 sps:$4 sm:$0xff]   ;;  %v1788_v13 = vshrl.u32 %v34_v12, 7  ;;  %v32_v15 = vld [vmem:[%s1978_s2] sm:$0x3]  ;;  %vm1118_vm1 = vcmask 125952  }
  0x46   :  { %v1415_v10 = vld [vmem:[%s1979_s3 + $0x14] ss:$28 sps:$4 sm:$0xff]   ;;  %v1420_v39 = vld [vmem:[%s1979_s3 + $0x4c] ss:$28 sps:$4 sm:$0xff]   ;;  %v1425_v43 = vld [vmem:[%s1979_s3 + $0x84] ss:$28 sps:$4 sm:$0xff]  }
  0x47   :  { %957 = vmatpush1.bf16.msra.mxu0 %v1397_v0  ;;  %916 = vmatpush1.bf16.msra.mxu1 %v1406_v5  ;;  %v1416_v11 = vld [vmem:[%s1979_s3 + $0x1d8] ss:$28 sps:$4 sm:$0xff]   ;;  %v36_v14 = vsub.s32 0, %v1788_v13  ;;  %v40_v16 = vsub.s32 1, %v1788_v13  ;;  %v1413_v37 = vld [vmem:[%s1979_s3 + $0x10] ss:$28 sps:$4 sm:$0xff]  }
  0x48   :  { %958 = vmatprep.subr.bf16.mxu0 %v1405_v3  ;;  %917 = vmatprep.subr.bf16.mxu1 %v1407_v6  ;;  %v1417_v38 = vld [vmem:[%s1979_s3 + $0x18] ss:$28 sps:$4 sm:$0xff]   ;;  %v1421_v40 = vld [vmem:[%s1979_s3 + $0x210] ss:$28 sps:$4 sm:$0xff]   ;;  %v1418_v41 = vld [vmem:[%s1979_s3 + $0x48] ss:$28 sps:$4 sm:$0xff]  }
  0x49   :  { %v37_v17 = vrot.slane %v32_v15, %v36_v14  ;;  %v41_v18 = vrot.slane %v32_v15, %v40_v16  ;;  %v1422_v42 = vld [vmem:[%s1979_s3 + $0x50] ss:$28 sps:$4 sm:$0xff]   ;;  %v1426_v44 = vld [vmem:[%s1979_s3 + $0x248] ss:$28 sps:$4 sm:$0xff]   ;;  %v1423_v45 = vld [vmem:[%s1979_s3 + $0x80] ss:$28 sps:$4 sm:$0xff]  }
  0x4a   :  { %v1427_v46 = vld [vmem:[%s1979_s3 + $0x88] ss:$28 sps:$4 sm:$0xff]   ;;  %v1430_v47 = vld [vmem:[%s1979_s3 + $0xbc] ss:$28 sps:$4 sm:$0xff]   ;;  %v1435_v51 = vld [vmem:[%s1979_s3 + $0xf4] ss:$28 sps:$4 sm:$0xff]  }
  0x4b   :  { %959 = vmatpush1.bf16.msra.mxu0 %v1403_v4  ;;  %918 = vmatpush1.bf16.msra.mxu1 %v1412_v9  ;;  %v1431_v48 = vld [vmem:[%s1979_s3 + $0x280] ss:$28 sps:$4 sm:$0xff]   ;;  %v1428_v49 = vld [vmem:[%s1979_s3 + $0xb8] ss:$28 sps:$4 sm:$0xff]   ;;  %v1433_v53 = vld [vmem:[%s1979_s3 + $0xf0] ss:$28 sps:$4 sm:$0xff]  }
  0x4c   :  { %960 = vmatprep.subr.bf16.mxu0 %v1411_v7  ;;  %973 = vmatprep.subr.bf16.mxu1 %v1415_v10  ;;  %v1432_v50 = vld [vmem:[%s1979_s3 + $0xc0] ss:$28 sps:$4 sm:$0xff]   ;;  %v1436_v52 = vld [vmem:[%s1979_s3 + $0x2b8] ss:$28 sps:$4 sm:$0xff]   ;;  %v1440_v55 = vld [vmem:[%s1979_s3 + $0x12c] ss:$28 sps:$4 sm:$0xff]  }
  0x4d   :  { %v1437_v54 = vld [vmem:[%s1979_s3 + $0xf8] ss:$28 sps:$4 sm:$0xff]   ;;  %v1441_v56 = vld [vmem:[%s1979_s3 + $0x2f0] ss:$28 sps:$4 sm:$0xff]   ;;  %v1438_v57 = vld [vmem:[%s1979_s3 + $0x128] ss:$28 sps:$4 sm:$0xff]  }
  0x4e   :  { %v1442_v58 = vld [vmem:[%s1979_s3 + $0x130] ss:$28 sps:$4 sm:$0xff]   ;;  %v1445_v59 = vld [vmem:[%s1979_s3 + $0x164] ss:$28 sps:$4 sm:$0xff]   ;;  %v1450_v63 = vld [vmem:[%s1979_s3 + $0x19c] ss:$28 sps:$4 sm:$0xff]  }
  0x4f   :  { %961 = vmatpush1.bf16.msra.mxu0 %v1409_v8  ;;  %v1446_v60 = vld [vmem:[%s1979_s3 + $0x328] ss:$28 sps:$4 sm:$0xff]   ;;  %v1443_v61 = vld [vmem:[%s1979_s3 + $0x160] ss:$28 sps:$4 sm:$0xff]   ;;  %v1448_v1 = vld [vmem:[%s1979_s3 + $0x198] ss:$28 sps:$4 sm:$0xff]  }
  0x50   :  { %1278 = vmatprep.subr.bf16.mxu0 %v1416_v11  ;;  %v1447_v62 = vld [vmem:[%s1979_s3 + $0x168] ss:$28 sps:$4 sm:$0xff]   ;;  %v1451_v0 = vld [vmem:[%s1979_s3 + $0x360] ss:$28 sps:$4 sm:$0xff]   ;;  %v1455_v3 = vld [vmem:[%s1979_s3 + $0x1d4] ss:$28 sps:$4 sm:$0xff]  }
  0x51   :  { %v1452_v2 = vld [vmem:[%s1979_s3 + $0x1a0] ss:$28 sps:$4 sm:$0xff]   ;;  %v1453_v4 = vld [vmem:[%s1979_s3 + $0x1d0] ss:$28 sps:$4 sm:$0xff]   ;;  %v1456_v6 = vld [vmem:[%s1979_s3 + $0x208] ss:$28 sps:$4 sm:$0xff]  }
  0x52   :  { %v1458_v5 = vld [vmem:[%s1979_s3 + $0x20c] ss:$28 sps:$4 sm:$0xff]   ;;  %v1461_v7 = vld [vmem:[%s1979_s3 + $0x244] ss:$28 sps:$4 sm:$0xff]   ;;  %v1464_v9 = vld [vmem:[%s1979_s3 + $0x27c] ss:$28 sps:$4 sm:$0xff]  }
  0x53   :  { %v1459_v8 = vld [vmem:[%s1979_s3 + $0x240] ss:$28 sps:$4 sm:$0xff]   ;;  %v1462_v10 = vld [vmem:[%s1979_s3 + $0x278] ss:$28 sps:$4 sm:$0xff]   ;;  %v1465_v12 = vld [vmem:[%s1979_s3 + $0x2b0] ss:$28 sps:$4 sm:$0xff]  }
  0x54   :  { %v1467_v11 = vld [vmem:[%s1979_s3 + $0x2b4] ss:$28 sps:$4 sm:$0xff]   ;;  %v1470_v15 = vld [vmem:[%s1979_s3 + $0x2ec] ss:$28 sps:$4 sm:$0xff]  }
  0xe5   :  { %v127_v19 = vpop.f32.mrb[0].mxu0 }
  0xe6   :  { %v128_v20 = vadd.f32 %v127_v19, %v37_v17  ;;  %v129_v21 = vpop.f32.mrb[1].mxu0  ;;  %v1471_v19 = vld [vmem:[%s1979_s3 + $0x320] ss:$28 sps:$4 sm:$0xff]  }
  0xe7   :  { %v130_v22 = vadd.f32 %v129_v21, %v41_v18  ;;  %v131_v23 = vpop.f32.mrb[2].mxu0  ;;  %v1474_v21 = vld [vmem:[%s1979_s3 + $0x358] ss:$28 sps:$4 sm:$0xff]  }
  0xe8   :  { %v136_v24 = vmul.f32 0.1, %v128_v20  ;;  %v132_v25 = vadd.f32 %v131_v23, %v37_v17  ;;  %v133_v26 = vpop.f32.mrb[3].mxu0  ;;  %v1468_v17 = vld [vmem:[%s1979_s3 + $0x2e8] ss:$28 sps:$4 sm:$0xff]  }
  0xe9   :  { %v137_v27 = vmul.f32 0.1, %v130_v22  ;;  %v134_v28 = vadd.f32 %v133_v26, %v41_v18  ;;  %v1473_v18 = vld [vmem:[%s1979_s3 + $0x324] ss:$28 sps:$4 sm:$0xff]  }
  0xea   :  { %v138_v29 = vmul.f32 0.1, %v132_v25  ;;  %v140_v31 = vmax.f32 %v128_v20, %v136_v24  ;;  %v1476_v20 = vld [vmem:[%s1979_s3 + $0x35c] ss:$28 sps:$4 sm:$0xff]   ;;  %v1947_v23 = vld [vmem:[%s1980_s4] sm:$0x7f] }
  0xeb   :  { %v139_v30 = vmul.f32 0.1, %v134_v28  ;;  %v141_v33 = vmax.f32 %v130_v22, %v137_v27  ;;  %v286_v22 = vsub.s32 2, %v1788_v13  ;;  %v290_v24 = vsub.s32 3, %v1788_v13  ;;  %s1530_s3 = smov [#allocation2]  }
  0xec   :  { %v142_v32 = vmax.f32 %v132_v25, %v138_v29  ;;  %v279_v25 = vrot.slane %v1947_v23, %v36_v14  ;;  %v283_v27 = vrot.slane %v1947_v23, %v40_v16  ;;  %s1129_s4 = sshll.u32 %s1530_s3, 4  ;;  %s1130_s4 = int_to_ptr.vmem [resolvable:$true] %s1129_s4 }
  0xed   :  { %v143_v34 = vmax.f32 %v134_v28, %v139_v30  ;;  %v287_v26 = vrot.slane %v1947_v23, %v286_v22  ;;  %v291_v28 = vrot.slane %v1947_v23, %v290_v24  ;;  %s1505_s19 = scalar_lea.vmem %s1130_s4, 896  ;;  %p1510_p1 = scmp.lt.s32.totalorder %s1130_s4, %s1130_s4 }
  0xee   :  { %v1799_v35 = vpack.c.bf16 %v142_v32, %v140_v31  ;;  %p1506_p0 = scmp.ne.s32.totalorder %s1130_s4, %s1505_s19  ;;  %p1511_p2 = scmp.lt.s32.totalorder %s1505_s19, %s1505_s19 }
  0xef   :  { %v145_v36 = vpack.c.bf16 %v143_v34, %v141_v33 }
  0xf0   :  { %p1512_p3 = por %p1511_p2, %p1510_p1 }
  0xf1   :  { %919 = vmatprep.mubr.bf16.mxu1 %v145_v36  ;;  %962 = vmatprep.mubr.bf16.mxu0 %v145_v36 }
  0xf2   :  { %920 = vmatmul.mubr.bf16.vlgmr.msra.gmra.mrb[0].mxu1 %v1799_v35  ;;  %963 = vmatmul.mubr.bf16.vlgmr.msra.gmra.mrb[4].mxu0 %v1799_v35  ;;  %p1513_p4 = pnand %p1512_p3, %p1506_p0 }
  0xf3   :  { %974 = vmatpush1.bf16.msra.mxu1 %v1413_v37  ;;  %1279 = vmatpush3.bf16.msra.mxu0 %v1417_v38 }
  0xf4   :  { %1005 = vmatprep.mubr.bf16.mxu1 %v145_v36  ;;  %1048 = vmatprep.mubr.bf16.mxu0 %v145_v36 }
  0xf5   :  { %975 = vmatprep.subr.bf16.mxu1 %v1420_v39  ;;  %1280 = vmatprep.subr.bf16.mxu0 %v1421_v40 }
  0xf7   :  { %976 = vmatpush1.bf16.msra.mxu1 %v1418_v41  ;;  %1281 = vmatpush3.bf16.msra.mxu0 %v1422_v42 }
  0xf8   :  { %977 = vmatprep.subr.bf16.mxu1 %v1425_v43  ;;  %1282 = vmatprep.subr.bf16.mxu0 %v1426_v44 }
  0xfb   :  { %978 = vmatpush1.bf16.msra.mxu1 %v1423_v45  ;;  %1283 = vmatpush3.bf16.msra.mxu0 %v1427_v46 }
  0xfc   :  { %979 = vmatprep.subr.bf16.mxu1 %v1430_v47  ;;  %1284 = vmatprep.subr.bf16.mxu0 %v1431_v48 }
  0xff   :  { %980 = vmatpush1.bf16.msra.mxu1 %v1428_v49  ;;  %1285 = vmatpush3.bf16.msra.mxu0 %v1432_v50 }
 0x100   :  { %981 = vmatprep.subr.bf16.mxu1 %v1435_v51  ;;  %1286 = vmatprep.subr.bf16.mxu0 %v1436_v52 }
 0x103   :  { %982 = vmatpush1.bf16.msra.mxu1 %v1433_v53  ;;  %1287 = vmatpush3.bf16.msra.mxu0 %v1437_v54 }
 0x104   :  { %983 = vmatprep.subr.bf16.mxu1 %v1440_v55  ;;  %1288 = vmatprep.subr.bf16.mxu0 %v1441_v56  ;;  %v302_v55 = vsub.s32 6, %v1788_v13 }
 0x107   :  { %984 = vmatpush1.bf16.msra.mxu1 %v1438_v57  ;;  %1289 = vmatpush3.bf16.msra.mxu0 %v1442_v58  ;;  %v303_v57 = vrot.slane %v1947_v23, %v302_v55 }
 0x108   :  { %985 = vmatprep.subr.bf16.mxu1 %v1445_v59  ;;  %1290 = vmatprep.subr.bf16.mxu0 %v1446_v60 }
 0x10b   :  { %986 = vmatpush1.bf16.msra.mxu1 %v1443_v61  ;;  %1291 = vmatpush3.bf16.msra.mxu0 %v1447_v62 }
 0x10c   :  { %987 = vmatprep.subr.bf16.mxu1 %v1450_v63  ;;  %1292 = vmatprep.subr.bf16.mxu0 %v1451_v0 }
 0x10f   :  { %988 = vmatpush1.bf16.msra.mxu1 %v1448_v1  ;;  %1293 = vmatpush3.bf16.msra.mxu0 %v1452_v2 }
 0x110   :  { %989 = vmatprep.subr.bf16.mxu1 %v1455_v3 }
 0x112   :  { %1049 = vmatmul.mubr.bf16.vlgmr.msra.gmra.mrb[8].mxu0 %v1799_v35 }
 0x113   :  { %990 = vmatpush1.bf16.msra.mxu1 %v1453_v4 }
 0x114   :  { %991 = vmatprep.subr.bf16.mxu1 %v1458_v5  ;;  %v294_v5 = vsub.s32 4, %v1788_v13 }
 0x117   :  { %992 = vmatpush1.bf16.msra.mxu1 %v1456_v6  ;;  %v298_v6 = vsub.s32 5, %v1788_v13 }
 0x118   :  { %993 = vmatprep.subr.bf16.mxu1 %v1461_v7  ;;  %v295_v7 = vrot.slane %v1947_v23, %v294_v5 }
 0x11b   :  { %994 = vmatpush1.bf16.msra.mxu1 %v1459_v8  ;;  %v299_v8 = vrot.slane %v1947_v23, %v298_v6 }
 0x11c   :  { %995 = vmatprep.subr.bf16.mxu1 %v1464_v9 }
 0x11f   :  { %996 = vmatpush1.bf16.msra.mxu1 %v1462_v10 }
 0x120   :  { %997 = vmatprep.subr.bf16.mxu1 %v1467_v11 }
 0x123   :  { %998 = vmatpush1.bf16.msra.mxu1 %v1465_v12 }
 0x124   :  { %999 = vmatprep.subr.bf16.mxu1 %v1470_v15 }
 0x127   :  { %1000 = vmatpush1.bf16.msra.mxu1 %v1468_v17 }
 0x128   :  { %1001 = vmatprep.subr.bf16.mxu1 %v1473_v18 }
 0x12b   :  { %1002 = vmatpush1.bf16.msra.mxu1 %v1471_v19 }
 0x12c   :  { %1003 = vmatprep.subr.bf16.mxu1 %v1476_v20 }
 0x12f   :  { %1004 = vmatpush1.bf16.msra.mxu1 %v1474_v21 }
 0x132   :  { %1006 = vmatmul.mubr.bf16.vlgmr.msra.gmra.mrb[4].mxu1 %v1799_v35 }
 0x1c5   :  { %v921_v29 = vpop.f32.mrb[0].mxu1  ;;  %v964_v30 = vpop.f32.mrb[4].mxu0 }
 0x1c6   :  { %v922_v31 = vadd.f32 %v921_v29, %v279_v25  ;;  %v965_v32 = vadd.f32 %v964_v30, %v287_v26  ;;  %v923_v33 = vpop.f32.mrb[1].mxu1  ;;  %v966_v34 = vpop.f32.mrb[5].mxu0 }
 0x1c7   :  { %v924_v35 = vadd.f32 %v923_v33, %v283_v27  ;;  %v967_v36 = vadd.f32 %v966_v34, %v291_v28  ;;  %v925_v37 = vpop.f32.mrb[2].mxu1  ;;  %v968_v38 = vpop.f32.mrb[6].mxu0 }
 0x1c8   :  { %1477 = vtanh.f32 %v922_v31  ;;  %v926_v14 = vadd.f32 %v925_v37, %v279_v25  ;;  %v927_v39 = vpop.f32.mrb[3].mxu1  ;;  %v970_v40 = vpop.f32.mrb[7].mxu0  ;;  %v969_v41 = vadd.f32 %v968_v38, %v287_v26 }
 0x1c9   :  { %1479 = vtanh.f32 %v965_v32  ;;  %v928_v16 = vadd.f32 %v927_v39, %v283_v27  ;;  %v971_v42 = vadd.f32 %v970_v40, %v291_v28 }
 0x1ca   :  { %1481 = vtanh.f32 %v924_v35 }
 0x1cb   :  { %1483 = vtanh.f32 %v967_v36 }
 0x1cc   :  { %1485 = vtanh.f32 %v926_v14 }
 0x1cd   :  { %1487 = vtanh.f32 %v969_v41 }
 0x1ce   :  { %1489 = vtanh.f32 %v928_v16 }
 0x1cf   :  { %1491 = vtanh.f32 %v971_v42 }
 0x1d2   :  { %v1478_v43 = vpop.eup %1477 }
 0x1d3   :  { %v1480_v44 = vpop.eup %1479 }
 0x1d4   :  { %v1482_v45 = vpop.eup %1481 }
 0x1d5   :  { %v1484_v46 = vpop.eup %1483  ;;  %v1270_v47 = vpack.c.bf16 %v1482_v45, %v1478_v43 }
 0x1d6   :  { %v1486_v48 = vpop.eup %1485  ;;  %v1271_v49 = vpack.c.bf16 %v1484_v46, %v1480_v44 }
 0x1d7   :  { %v1488_v50 = vpop.eup %1487  ;;  %1115 = vst [vmem:[#allocation2] sm:$0xff] %v1270_v47 }
 0x1d8   :  { %v1490_v51 = vpop.eup %1489  ;;  %1116 = vst [vmem:[#allocation2 + $0x8] sm:$0xff] %v1271_v49 }
 0x1d9   :  { %v1492_v52 = vpop.eup %1491  ;;  %v1274_v53 = vpack.c.bf16 %v1490_v51, %v1486_v48 }
 0x1da   :  { %v1275_v54 = vpack.c.bf16 %v1492_v52, %v1488_v50 }
 0x1db   :  { %1120 = vst [vmem:[#allocation2 + $0x1c] sm:$0xff] %v1274_v53 }
 0x1dc   :  { %1121 = vst [vmem:[#allocation2 + $0x24] sm:$0xff] %v1275_v54 }
 0x1e5   :  { %v1294_v56 = vpop.f32.mrb[8].mxu0 }
 0x1e6   :  { %v1295_v58 = vpop.f32.mrb[9].mxu0 }
 0x1e7   :  { %v1296_v59 = vadd.f32 %v1295_v58, %v1294_v56  ;;  %v1297_v60 = vpop.f32.mrb[10].mxu0 }
 0x1e8   :  { %v1298_v61 = vpop.f32.mrb[11].mxu0 }
 0x1e9   :  { %v1051_v62 = vadd.f32 %v1296_v59, %v303_v57  ;;  %v1299_v63 = vadd.f32 %v1298_v61, %v1297_v60 }
 0x1eb   :  { %1493 = vtanh.f32 %v1051_v62  ;;  %v1054_v0 = vadd.f32 %v1299_v63, %v303_v57 }
 0x1ed   :  { %1495 = vtanh.f32 %v1054_v0 }
 0x1f5   :  { %v1494_v1 = vpop.eup %1493 }
 0x1f6   :  { %v1273_v2 = vpack.c.bf16 %v1494_v1, %v1494_v1 }
 0x1f7   :  { %v1496_v3 = vpop.eup %1495 }
 0x1f8   :  { %1119 = vst.msk [vmem:[#allocation2 + $0x18] sm:$0xf] %vm1118_vm1, %v1273_v2  ;;  %v1277_v4 = vpack.c.bf16 %v1496_v3, %v1496_v3 }
 0x1fa   :  { %1123 = vst.msk [vmem:[#allocation2 + $0x34] sm:$0xf] %vm1118_vm1, %v1277_v4 }
 0x205   :  { %v1007_v9 = vpop.f32.mrb[4].mxu1 }
 0x206   :  { %v1008_v10 = vadd.f32 %v1007_v9, %v295_v7  ;;  %v1009_v11 = vpop.f32.mrb[5].mxu1 }
 0x207   :  { %v1010_v12 = vadd.f32 %v1009_v11, %v299_v8  ;;  %v1011_v15 = vpop.f32.mrb[6].mxu1 }
 0x208   :  { %1497 = vtanh.f32 %v1008_v10  ;;  %v1012_v17 = vadd.f32 %v1011_v15, %v295_v7  ;;  %v1013_v18 = vpop.f32.mrb[7].mxu1 }
 0x209   :  { %1499 = vtanh.f32 %v1010_v12  ;;  %v1014_v19 = vadd.f32 %v1013_v18, %v299_v8 }
 0x20a   :  { %1501 = vtanh.f32 %v1012_v17 }
 0x20b   :  { %1503 = vtanh.f32 %v1014_v19 }
 0x212   :  { %v1498_v20 = vpop.eup %1497 }
 0x213   :  { %v1500_v21 = vpop.eup %1499 }
 0x214   :  { %v1502_v13 = vpop.eup %1501  ;;  %v1272_v22 = vpack.c.bf16 %v1500_v21, %v1498_v20 }
 0x215   :  { %v1504_v24 = vpop.eup %1503 }
 0x216   :  { %1117 = vst [vmem:[#allocation2 + $0x10] sm:$0xff] %v1272_v22  ;;  %v1276_v23 = vpack.c.bf16 %v1504_v24, %v1502_v13 }
 0x218   :  { %1122 = vst [vmem:[#allocation2 + $0x2c] sm:$0xff] %v1276_v23 }
 0x219   :  { %1516 = shalt.err (!%p1513_p4)
}
 0x21a   :  { %s1517_s22 = scalar_lea.hbm %s1981_s5, 896 }
 0x21b   :  { %p1518_p5 = scmp.ne.s32.totalorder %s1981_s5, %s1517_s22  ;;  %p1521_p6 = scmp.lt.u32.totalorder %s1517_s22, %s1981_s5 }
 0x21d   :  { %p1523_p7 = pnand %p1521_p6, %p1518_p5 }
 0x21f   :  { %1526 = shalt.err (!%p1523_p7)
}
 0x220   :  { %s1531_s26 = smov 448   ;;  %s1532_s27 = smov 28  }
 0x221   :  { %1135 = dma.vmem_to_hbm [thread:$0]  %s1130_s4, 896, %s1981_s5, [#allocation3], %s1531_s26, %s1531_s26, %s1532_s27  }
 0x222   :  { %1527 = dma.done.wait [#allocation3], 896  }
 0x223   :  { %1528 = vsyncadd [#allocation3], 4294966400 }
 0x224   :  { %1139 = vsyncpa [#allocation3], 1 }

</bundles_post_ra>
